<compile_context>
chip_gen: v6e
topology: v6e:2x2x1
jax: 0.10.0
libtpu: 0.0.40
codegen_flags: <defaults>
</compile_context>

<pallas_src>
import jax
import jax.numpy as jnp
from jax.experimental import pallas as pl
from jax.experimental.pallas import tpu as pltpu


def _round_up(x: int, m: int) -> int:
    return ((x + m - 1) // m) * m


def _feature_extractor_kernel(cat_ref, num_ref, table_ref, out_ref):
    """One batch tile.

    cat_ref   : (Bt, F)          int32, indices already offset into the fused vocab
    num_ref   : (Bt, D_num_pad)  f32, numerical feats zero-padded on the right
    table_ref : (K_pad, N_emb)   f32, block-diagonal fused embedding table
    out_ref   : (Bt, N_emb + D_num_pad) f32
    """
    cat = cat_ref[...]
    bt, n_feat = cat.shape
    k_pad = table_ref.shape[0]

    # Multi-hot over the fused vocabulary: one '1' per feature column.  The
    # per-feature vocab ranges are disjoint (block-diagonal row offsets), so a
    # single MXU matmul yields every embedding slab in its own column block.
    iota = jax.lax.broadcasted_iota(jnp.int32, (bt, k_pad), 1)  # built once per tile
    multihot = jnp.zeros((bt, k_pad), dtype=jnp.float32)
    for i in range(n_feat):  # small static loop over feature columns
        multihot = multihot + (iota == cat[:, i][:, None]).astype(jnp.float32)

    emb = jnp.dot(multihot, table_ref[...], preferred_element_type=jnp.float32)

    # Single lane-dense full-tile store: [embedding slab | padded numerical tail].
    out_ref[...] = jnp.concatenate([emb, num_ref[...]], axis=-1)


def feature_extractor(categorical_feats, numerical_feats, tables, *, block_b=256):
    """Pallas wrapper.

    categorical_feats: (B, F) int32 — one column per embedding table.
    numerical_feats:   (B, D_num) float32.
    tables:            list of (num_unique_i, emb_dim_i) float32 arrays.
    Returns (B, sum_i emb_dim_i + D_num) float32, matching
    torch.concat([emb_i(cat[:, i])...] + [numerical], dim=-1).
    """
    B, F = categorical_feats.shape
    D_num = int(numerical_feats.shape[1])
    n_uniques = [int(t.shape[0]) for t in tables]
    emb_dims = [int(t.shape[1]) for t in tables]
    N_emb = sum(emb_dims)
    total_dim = N_emb + D_num

    # --- Fuse tables into one block-diagonal table (done once per call). ---
    K = sum(n_uniques)
    K_pad = _round_up(K, 128)  # lane-dense multi-hot / MXU-friendly K
    fused = jnp.zeros((K_pad, N_emb), dtype=jnp.float32)
    row_off, col_off, offsets = 0, 0, []
    for t, nu, ed in zip(tables, n_uniques, emb_dims):
        fused = fused.at[row_off:row_off + nu, col_off:col_off + ed].set(
            t.astype(jnp.float32))
        offsets.append(row_off)
        row_off += nu
        col_off += ed
    offsets = jnp.asarray(offsets, dtype=jnp.int32)  # (F,)

    # --- Offset the indices once in the wrapper (vectorized add). ---
    cat_off = categorical_feats.astype(jnp.int32) + offsets[None, :]

    # --- Pad batch and lane dims so every block is (8,128)-friendly. ---
    block_b = max(8, min(block_b, _round_up(B, 8)))
    B_pad = _round_up(B, block_b)
    total_pad = _round_up(total_dim, 128)
    D_num_pad = total_pad - N_emb  # >= D_num by construction

    cat_p = jnp.pad(cat_off, ((0, B_pad - B), (0, 0)))
    num_p = jnp.pad(numerical_feats.astype(jnp.float32),
                    ((0, B_pad - B), (0, D_num_pad - D_num)))

    grid = (B_pad // block_b,)
    out_padded = pl.pallas_call(
        _feature_extractor_kernel,
        out_shape=jax.ShapeDtypeStruct((B_pad, total_pad), jnp.float32),
        grid_spec=pltpu.PrefetchScalarGridSpec(
            num_scalar_prefetch=0,
            grid=grid,
            in_specs=[
                pl.BlockSpec((block_b, F), lambda b: (b, 0)),          # cat tile
                pl.BlockSpec((block_b, D_num_pad), lambda b: (b, 0)),  # num tile
                pl.BlockSpec((K_pad, N_emb), lambda b: (0, 0)),        # resident table
            ],
            out_specs=pl.BlockSpec((block_b, total_pad), lambda b: (b, 0)),
        ),
        compiler_params=pltpu.CompilerParams(
            dimension_semantics=("parallel",),  # v7x: shard batch tiles over 2 TCs
        ),
    )(cat_p, num_p, fused)

    return out_padded[:B, :total_dim]


if __name__ == "__main__":
    key = jax.random.PRNGKey(0)

    # Small synthetic configuration (mirrors embedding_sizes in __init__).
    embedding_sizes = [(11, 8), (23, 16), (7, 8)]  # (num_unique, emb_dim)
    batch = 16
    num_numerical = 4

    keys = jax.random.split(key, len(embedding_sizes) + 2)

    # Deterministic parameter init (nn.Embedding ~ N(0,1) weights).
    tables = [
        jax.random.normal(keys[i], (nu, ed), dtype=jnp.float32)
        for i, (nu, ed) in enumerate(embedding_sizes)
    ]

    # Deterministic inputs (valid in-range indices; torch would raise on OOB).
    cat_cols = [
        jax.random.randint(jax.random.fold_in(keys[-2], i), (batch,), 0, nu,
                           dtype=jnp.int32)
        for i, (nu, _) in enumerate(embedding_sizes)
    ]
    categorical_feats = jnp.stack(cat_cols, axis=1)                      # (B, F)
    numerical_feats = jax.random.normal(keys[-1], (batch, num_numerical),
                                        dtype=jnp.float32)               # (B, D_num)

    # block_b=8 exercises a multi-step batch grid even at this toy size.
    out = feature_extractor(categorical_feats, numerical_feats, tables, block_b=8)
    out = jax.block_until_ready(out)

    # Pure-JAX reference (torch semantics: gather each column, concat last dim).
    ref_embs = [jnp.take(t, categorical_feats[:, i], axis=0)
                for i, t in enumerate(tables)]
    ref = jnp.concatenate(ref_embs + [numerical_feats], axis=-1)

    assert out.shape == ref.shape, (out.shape, ref.shape)
    assert jnp.allclose(out, ref, atol=1e-5, rtol=1e-5), "mismatch vs reference"

    print("KERNEL_OK")
</pallas_src>

<mosaic_0001>
module attributes {stable_mosaic.version = 11 : i64} {
  func.func @_feature_extractor_kernel(%arg0: i32, %arg1: memref<8x3xi32, #tpu.memory_space<vmem>>, %arg2: memref<8x96xf32, #tpu.memory_space<vmem>>, %arg3: memref<128x32xf32, #tpu.memory_space<vmem>>, %arg4: memref<8x128xf32, #tpu.memory_space<vmem>>) attributes {dimension_semantics = [#tpu.dimension_semantics<parallel>], iteration_bounds = array<i64: 2>, scalar_prefetch = 0 : i64, scratch_operands = 0 : i64, tpu.core_type = #tpu.core_type<tc>, window_params = [{transform_indices = @transform_0, window_bounds = array<i64: 8, 3>}, {transform_indices = @transform_1, window_bounds = array<i64: 8, 96>}, {pipeline_mode = #tpu.pipeline_mode<synchronous>, transform_indices = @transform_2, window_bounds = array<i64: 128, 32>}, {transform_indices = @transform_3, window_bounds = array<i64: 8, 128>}]} {
    %c0 = arith.constant 0 : index
    %c0_0 = arith.constant 0 : index
    %0 = vector.load %arg1[%c0, %c0_0] : memref<8x3xi32, #tpu.memory_space<vmem>>, vector<8x3xi32>
    %1 = tpu.iota {dimensions = array<i32: 1>} : vector<8x128xi32>
    %cst = arith.constant 0.000000e+00 : f32
    %2 = vector.broadcast %cst : f32 to vector<8x128xf32>
    %3 = vector.extract_strided_slice %0 {offsets = [0, 0], sizes = [8, 1], strides = [1, 1]} : vector<8x3xi32> to vector<8x1xi32>
    %4 = vector.shape_cast %3 : vector<8x1xi32> to vector<8xi32>
    %5 = vector.shape_cast %4 : vector<8xi32> to vector<8x1xi32>
    %6 = vector.broadcast %5 : vector<8x1xi32> to vector<8x128xi32>
    %7 = arith.cmpi eq, %1, %6 : vector<8x128xi32>
    %8 = arith.extui %7 : vector<8x128xi1> to vector<8x128xi32>
    %9 = arith.sitofp %8 : vector<8x128xi32> to vector<8x128xf32>
    %10 = arith.addf %2, %9 : vector<8x128xf32>
    %11 = vector.extract_strided_slice %0 {offsets = [0, 1], sizes = [8, 1], strides = [1, 1]} : vector<8x3xi32> to vector<8x1xi32>
    %12 = vector.shape_cast %11 : vector<8x1xi32> to vector<8xi32>
    %13 = vector.shape_cast %12 : vector<8xi32> to vector<8x1xi32>
    %14 = vector.broadcast %13 : vector<8x1xi32> to vector<8x128xi32>
    %15 = arith.cmpi eq, %1, %14 : vector<8x128xi32>
    %16 = arith.extui %15 : vector<8x128xi1> to vector<8x128xi32>
    %17 = arith.sitofp %16 : vector<8x128xi32> to vector<8x128xf32>
    %18 = arith.addf %10, %17 : vector<8x128xf32>
    %19 = vector.extract_strided_slice %0 {offsets = [0, 2], sizes = [8, 1], strides = [1, 1]} : vector<8x3xi32> to vector<8x1xi32>
    %20 = vector.shape_cast %19 : vector<8x1xi32> to vector<8xi32>
    %21 = vector.shape_cast %20 : vector<8xi32> to vector<8x1xi32>
    %22 = vector.broadcast %21 : vector<8x1xi32> to vector<8x128xi32>
    %23 = arith.cmpi eq, %1, %22 : vector<8x128xi32>
    %24 = arith.extui %23 : vector<8x128xi1> to vector<8x128xi32>
    %25 = arith.sitofp %24 : vector<8x128xi32> to vector<8x128xf32>
    %26 = arith.addf %18, %25 : vector<8x128xf32>
    %c0_1 = arith.constant 0 : index
    %c0_2 = arith.constant 0 : index
    %27 = vector.load %arg3[%c0_1, %c0_2] : memref<128x32xf32, #tpu.memory_space<vmem>>, vector<128x32xf32>
    %cst_3 = arith.constant dense<0.000000e+00> : vector<8x32xf32>
    %28 = tpu.matmul %26, %27, %cst_3 {dimension_numbers = #tpu.dot_dimension_numbers<[1], [0], [0], [1], [0, 0, 1, 1], [], []>} : vector<8x128xf32>, vector<128x32xf32>, vector<8x32xf32> -> vector<8x32xf32>
    %c0_4 = arith.constant 0 : index
    %c0_5 = arith.constant 0 : index
    %29 = vector.load %arg2[%c0_4, %c0_5] : memref<8x96xf32, #tpu.memory_space<vmem>>, vector<8x96xf32>
    %30 = tpu.concatenate %28, %29 in 1 : vector<8x32xf32>, vector<8x96xf32> -> vector<8x128xf32>
    %c0_6 = arith.constant 0 : index
    %c0_7 = arith.constant 0 : index
    %31 = vector.load %arg4[%c0_6, %c0_7] : memref<8x128xf32, #tpu.memory_space<vmem>>, vector<8x128xf32>
    tpu.vector_store %arg4[%c0_6, %c0_7], %30 {strides = array<i32>} : memref<8x128xf32, #tpu.memory_space<vmem>>, vector<8x128xf32>,
    return
  }
  func.func @transform_0(%arg0: i32) -> (i32, i32) {
    %c0_i32 = arith.constant 0 : i32
    %c0_i32_0 = arith.constant 0 : i32
    return %arg0, %c0_i32 : i32, i32
  }
  func.func @transform_1(%arg0: i32) -> (i32, i32) {
    %c0_i32 = arith.constant 0 : i32
    %c0_i32_0 = arith.constant 0 : i32
    return %arg0, %c0_i32 : i32, i32
  }
  func.func @transform_2(%arg0: i32) -> (i32, i32) {
    %c0_i32 = arith.constant 0 : i32
    %c0_i32_0 = arith.constant 0 : i32
    %c0_i32_1 = arith.constant 0 : i32
    return %c0_i32, %c0_i32_0 : i32, i32
  }
  func.func @transform_3(%arg0: i32) -> (i32, i32) {
    %c0_i32 = arith.constant 0 : i32
    %c0_i32_0 = arith.constant 0 : i32
    return %arg0, %c0_i32 : i32, i32
  }
}

</mosaic_0001>

<bundles_post_ra>
// kernel: tpu_custom_call.1
= control target key start
LH: loop header
LB: loop body
LE: loop exit
PB: predicated region body
PF: predicated region fallthrough
CT: control target
= control target key end

     0   :  { %8 = vsyncpa [#allocation3], 0  ;;  %s763_s0 = inlined_call_operand.vmem [shape: s32[16,3], index: 0, kind: input, shape index: {}]   ;;  %s764_s1 = inlined_call_operand.vmem [shape: f32[16,96], index: 1, kind: input, shape index: {}]   ;;  %s765_s2 = inlined_call_operand.vmem [shape: f32[128,32], index: 2, kind: input, shape index: {}]   ;;  %s766_s3 = inlined_call_operand.hbm [shape: f32[16,128], index: 3, kind: output, shape index: {}]  }
   0x1   :  { %10 = vsyncpa [#allocation3 + $0x1], 0  ;;  %s590_s12 = smov 0   ;;  %s592_s13 = smov 0  }
   0x2   :  { %s594_s14 = smov 0   ;;  %s596_s15 = smov 0  }
   0x3 LB: > { %s611_s16 = sadd.s32 4294967295, %s561_s15   ;;  %s386_s17 = sadd.s32 4294967294, %s561_s15   ;;  %s561_s15 = sphi %s596_s15, %s772_s15   ;;  %s557_s14 = sphi %s594_s14, %s771_s14   ;;  %s553_s13 = sphi %s592_s13, %s770_s13   ;;  %s549_s12 = sphi %s590_s12, %s769_s12  }
   0x4   : > { %s615_s18 = sadd.s32 1, %s561_s15   ;;  %s96_s19 = sadd.s32 1, %s557_s14 }
   0x5   : > { %s93_s20 = ssub.s32 %s561_s15, %s615_s18  ;;  %p106_p0 = scmp.ne.s32.totalorder %s557_s14, %s553_s13 }
   0x6   : > { %p94_p1 = scmp.eq.s32.totalorder %s93_s20, 0  ;;  %p107_p2 = scmp.eq.s32.totalorder %s611_s16, 1 }
   0x7   : > { %p112_p3 = scmp.ne.s32.totalorder %s553_s13, %s549_s12  ;;  %p113_p4 = scmp.eq.s32.totalorder %s386_s17, 1 }
   0x8   : > { %s626_s21 = scalar_select %p94_p1, %s557_s14, %s96_s19  }
   0x9   : > { %p628_p5 = por %p107_p2, %p106_p0  ;;  %p632_p6 = por %p113_p4, %p112_p3 }
   0xa   : > { %p389_p7 = scmp.ge.s32.totalorder %s561_s15, 1  ;;  %p148_p8 = scmp.lt.s32.totalorder %s561_s15, 3 }
   0xc   : > { %p149_p9 = pnand %p389_p7, %p148_p8 }
   0xd   : > { %p175_p10 = scmp.lt.s32.totalorder (!%p149_p9), %s611_s16, 1  ;;  %s568_s4 = smov (!%p149_p9), 32  }
   0xe   : > { %152 = sbr.rel (%p149_p9) target bundleno = 366 (0x16e), region = 32  ;;  %s172_s30 = sand.u32 (!%p149_p9), 1, %s553_s13  }
   0xf   : > { %s302_s10 = scalar_lea.sflag (!%p149_p9), [#allocation3], %s172_s30  ;;  %s569_s11 = smov (!%p149_p9), [#allocation2]  }
  0x10   : > { %s505_s17 = sshll.u32 (!%p149_p9), %s569_s11, 4  ;;  %s506_s17 = int_to_ptr.vmem [resolvable:$false] %s505_s17 }
  0x11   : > { %s507_s19 = scalar_lea.vmem (!%p149_p9), %s506_s17, 256 }
  0x13   : > { %v222_v0 = vld [vmem:[%s765_s2 + $0x78] sm:$0xff]  ;;  %v563_v1 = vmov 0   ;;  %v564_v2 = vmov 2   ;;  %s643_s26 = scalar_select %p175_p10, %s611_s16, 1  ;;  %v565_v3 = vmov 0.0   ;;  %v221_v4 = vld [vmem:[%s765_s2 + $0x70] sm:$0xff]  ;;  %v184_v22 = vlaneseq }
  0x14   : > { %497 = vset.pattern.permute.xlu0 %v563_v1  ;;  %499 = vset.pattern.permute.xlu1 %v564_v2  ;;  %v220_v5 = vld [vmem:[%s765_s2 + $0x68] sm:$0xff]  ;;  %v219_v7 = vld [vmem:[%s765_s2 + $0x60] sm:$0xff]  ;;  %v218_v8 = vld [vmem:[%s765_s2 + $0x58] sm:$0xff]  ;;  %v566_v9 = vmov 1   ;;  %vm567_vm0 = vmmov 0   ;;  %vm298_vm4 = vcmask 261120  }
  0x15   : > { %417 = vmatprep.subr.mxu0 %v565_v3  ;;  %s391_s29 = sshll.u32 %s643_s26, 3  ;;  %v217_v10 = vld [vmem:[%s765_s2 + $0x50] sm:$0xff]  ;;  %v216_v11 = vld [vmem:[%s765_s2 + $0x48] sm:$0xff]  ;;  %449 = vmatprep.mubr.msk.f32.mxu0 %vm567_vm0, %v565_v3  ;;  %v215_v12 = vld [vmem:[%s765_s2 + $0x40] sm:$0xff]  ;;  %v185_v23 = vand.u32 127, %v184_v22 }
  0x16   : > { %418 = vmatpush3.msra.mxu0 %v222_v0  ;;  %s178_s5 = scalar_lea.vmem %s763_s0, %s391_s29  ;;  %s182_s27 = scalar_lea.vmem %s764_s1, %s391_s29  ;;  %v214_v14 = vld [vmem:[%s765_s2 + $0x38] sm:$0xff]  ;;  %v213_v15 = vld [vmem:[%s765_s2 + $0x30] sm:$0xff]  ;;  %v212_v16 = vld [vmem:[%s765_s2 + $0x28] sm:$0xff] }
  0x17   : > { %419 = vmatprep.subr.mxu0 %v565_v3  ;;  %v183_v6 = vld [vmem:[%s178_s5] sm:$0xff]  ;;  %v210_v18 = vld [vmem:[%s765_s2 + $0x18] sm:$0xff]  ;;  %v209_v19 = vld [vmem:[%s765_s2 + $0x10] sm:$0xff]  ;;  %s397_s5 = sshll.u32 %s611_s16, 7 }
  0x18   : > { %420 = vmatpush3.msra.mxu0 %v221_v4  ;;  %187 = vperm.xlu0 %497, %v183_v6   ;;  %v293_v13 = vld [vmem:[%s182_s27] sm:$0xff]  ;;  %v208_v20 = vld [vmem:[%s765_s2 + $0x8] sm:$0xff]  ;;  %s722_s9 = scalar_lea.hbm %s766_s3, %s397_s5 }
  0x19   : > { %421 = vmatprep.subr.mxu0 %v565_v3  ;;  %201 = vperm.xlu1 %499, %v183_v6   ;;  %v211_v17 = vld [vmem:[%s765_s2 + $0x20] sm:$0xff] }
  0x1a   : > { %422 = vmatpush3.msra.mxu0 %v220_v5  ;;  %v207_v21 = vld [vmem:[%s765_s2] sm:$0xff] }
  0x1b   : > { %423 = vmatprep.subr.mxu0 %v565_v3 }
  0x1c   : > { %424 = vmatpush3.msra.mxu0 %v219_v7  ;;  %498 = vset.pattern.permute.xlu0 %v566_v9 }
  0x1d   : > { %425 = vmatprep.subr.mxu0 %v565_v3  ;;  %194 = vperm.xlu0 %498, %v183_v6  }
  0x1e   : > { %426 = vmatpush3.msra.mxu0 %v218_v8  ;;  %295 = vrot.lane.b32.xlu1 %v293_v13, %s568_s4  ;;  %s390_s4 = sshll.u32 %s172_s30, 3 }
  0x1f   : > { %427 = vmatprep.subr.mxu0 %v565_v3  ;;  %s174_s6 = scalar_lea.vmem [#allocation2], %s390_s4 }
  0x20   : > { %428 = vmatpush3.msra.mxu0 %v217_v10  ;;  %s315_s29 = sshll.u32 %s174_s6, 4  ;;  %s724_s29 = int_to_ptr.vmem [resolvable:$true] %s315_s29 }
  0x21   : > { %429 = vmatprep.subr.mxu0 %v565_v3  ;;  %500 = vset.pattern.permute.xlu0 %v564_v2  ;;  %s501_s16 = scalar_lea.vmem %s724_s29, 128  ;;  %p508_p0 = scmp.lt.s32.totalorder %s724_s29, %s506_s17 }
  0x22   : > { %430 = vmatpush3.msra.mxu0 %v216_v11  ;;  %p502_p11 = scmp.ne.s32.totalorder %s724_s29, %s501_s16  ;;  %p509_p1 = scmp.lt.s32.totalorder %s507_s19, %s501_s16 }
  0x23   : > { %431 = vmatprep.subr.mxu0 %v565_v3 }
  0x24   : > { %432 = vmatpush3.msra.mxu0 %v215_v12  ;;  %p503_p12 = pnand %p502_p11, %p628_p5  ;;  %p510_p2 = por %p509_p1, %p508_p0 }
  0x25   : > { %433 = vmatprep.subr.mxu0 %v565_v3 }
  0x26   : > { %434 = vmatpush3.msra.mxu0 %v214_v14  ;;  %p504_p13 = pneg %p503_p12 }
  0x27   : > { %435 = vmatprep.subr.mxu0 %v565_v3 }
  0x28   : > { %436 = vmatpush3.msra.mxu0 %v213_v15  ;;  %p511_p3 = pnand %p510_p2, %p504_p13 }
  0x29   : > { %437 = vmatprep.subr.mxu0 %v565_v3 }
  0x2a   : > { %438 = vmatpush3.msra.mxu0 %v212_v16 }
  0x2b   : > { %439 = vmatprep.subr.mxu0 %v565_v3 }
  0x2c   : > { %440 = vmatpush3.msra.mxu0 %v211_v17 }
  0x2d   : > { %441 = vmatprep.subr.mxu0 %v565_v3 }
  0x2e   : > { %442 = vmatpush3.msra.mxu0 %v210_v18 }
  0x2f   : > { %443 = vmatprep.subr.mxu0 %v565_v3 }
  0x30   : > { %444 = vmatpush3.msra.mxu0 %v209_v19 }
  0x31   : > { %445 = vmatprep.subr.mxu0 %v565_v3 }
  0x32   : > { %446 = vmatpush3.msra.mxu0 %v208_v20 }
  0x33   : > { %447 = vmatprep.subr.mxu0 %v565_v3 }
  0x34   : > { %448 = vmatpush3.msra.mxu0 %v207_v21 }
  0x93   : > { %v188_v24 = vpop.permute.xlu0 %187 }
  0x94   : > { %v202_v25 = vpop.permute.xlu1 %201  ;;  %vm189_vm1 = vcmp.eq.s32.totalorder %v185_v23, %v188_v24 }
  0x95   : > { %vm203_vm2 = vcmp.eq.s32.totalorder %v185_v23, %v202_v25  ;;  %v393_v27 = vsel %vm189_vm1, 1.0, %v565_v3 }
  0x96   : > { %v395_v29 = vsel %vm203_vm2, 1.0, %v565_v3 }
  0x98   : > { %v195_v26 = vpop.permute.xlu0 %194  ;;  %v296_v32 = vpop.permute.xlu1 %295 }
  0x99   : > { %vm196_vm3 = vcmp.eq.s32.totalorder %v185_v23, %v195_v26 }
  0x9a   : > { %v394_v28 = vsel %vm196_vm3, 1.0, %v565_v3 }
  0x9b   : > { %v199_v30 = vadd.f32 %v394_v28, %v393_v27 }
  0x9d   : > { %v206_v31 = vadd.f32 %v395_v29, %v199_v30 }
  0x9f   : > { %450 = vmatmul.mubr.f32.vlgmr.msra.gmra.mxu0 %v206_v31 }
 0x15f   : > { %v289_v33 = vpop.f32.mrf.mxu0 }
 0x160   : > { %v299_v34 = vsel %vm298_vm4, %v289_v33, %v296_v32 }
 0x161   : > { %300 = vst [vmem:[%s174_s6] sm:$0xff] %v299_v34  ;;  %v451_v35 = vpop.f32.mrf.mxu0 }
 0x162   : > { %514 = shalt.err (!%p511_p3)
}
 0x163   : > { %s515_s20 = scalar_lea.hbm %s722_s9, 128  ;;  %s519_s26 = scalar_lea.hbm %s766_s3, 256 }
 0x164   : > { %p516_p4 = scmp.ne.s32.totalorder %s722_s9, %s515_s20  ;;  %p520_p9 = scmp.lt.s32.totalorder %s722_s9, %s766_s3 }
 0x165   : > { %p521_p10 = scmp.lt.s32.totalorder %s519_s26, %s515_s20 }
 0x166   : > { %p517_p7 = pnand %p516_p4, %p628_p5 }
 0x167   : > { %p522_p11 = por %p521_p10, %p520_p9 }
 0x168   : > { %p518_p8 = pneg %p517_p7 }
 0x16a   : > { %p523_p12 = pnand %p522_p11, %p518_p8 }
 0x16c   : > { %526 = shalt.err (!%p523_p12)
}
 0x16d   : > { %452 = dma.vmem_to_hbm [thread:$0]  (%p628_p5), %s724_s29, 128, %s722_s9, %s302_s10  }
 0x16e PF: > { %p458_p13 = scmp.ge.s32.totalorder %s561_s15, 2  ;;  %s327_s30 = sand.u32 1, %s549_s12  }
 0x16f   : > { %s328_s4 = scalar_lea.sflag [#allocation3], %s327_s30 }
 0x170   : > { %p455_p0 = pnand %p458_p13, %p632_p6 }
 0x172   : > { %p456_p1 = pneg %p455_p0 }
 0x174   : > { %544 = dma.done.wait (%p456_p1), %s328_s4, 128  }
 0x175   : > { %546 = vsyncadd (%p456_p1), %s328_s4, 4294967168  ;;  %p13_p2 = scmp.ge.s32.totalorder %s615_s18, 4   ;;  %s769_s12 = smov %s553_s13 }
 0x176   : > { %s770_s13 = smov %s557_s14  ;;  %s771_s14 = smov %s626_s21 }
 0x177   : > { %s772_s15 = smov %s615_s18  ;;  %15 = sbr.rel (!%p13_p2) target bundleno = 3 (0x3), region = 70 }
 0x17c   :  { %333 = vsyncpa [#allocation3], 1 }
 0x17d   :  { %335 = vsyncpa [#allocation3 + $0x1], 1 }

</bundles_post_ra>
